<compile_context>
chip_gen: v5e
topology: v5e:2x2
jax: 0.10.0
libtpu: 0.0.40
codegen_flags: <defaults>
</compile_context>

<pallas_src>
import functools

import numpy as np
import jax
import jax.numpy as jnp
from jax.experimental import pallas as pl
from jax.experimental.pallas import tpu as pltpu


def _round_up(x, m):
    return (x + m - 1) // m * m


# ----------------------------- Pallas kernels ------------------------------

def _vdn_rowsum_kernel(q_ref, out_ref):
    # q_ref: (tb, A) f32 ; out_ref: (tb, 1) f32 -- sum over the agent axis.
    out_ref[...] = jnp.sum(q_ref[...], axis=-1, keepdims=True)


def _vdn_folded_kernel(q_ref, out_ref, *, n_agents):
    # Lane-dense VDN: q_ref (tg, A, 128) where lane j of (g, a) holds
    # q[g*128 + j, a]; out_ref (tg, 128).  Exact f32 adds of aligned 128-lane
    # slabs -- no MXU, no lane shuffles, lane-dense output stores.
    acc = q_ref[:, 0, :]
    for a in range(1, n_agents):
        acc = acc + q_ref[:, a, :]
    out_ref[...] = acc


def _qmix_kernel(q_ref, s_ref, fw_ref, fb_ref, wv2_ref, bv2_ref, out_ref,
                 *, n_agents, embed_dim):
    """QMix mixing for one batch tile.

    q_ref  : (TB, A)     f32   per-agent chosen-action values
    s_ref  : (TB, S)     f32   flattened global state (cast to bf16 in-kernel)
    fw_ref : (S, Cpad)   bf16  fused hypernet weight [w1 | wb1 | wf | wv1 | 0pad]
    fb_ref : (1, Cpad)   f32   fused hypernet bias
    wv2_ref: (1, E)      f32   V[2] weight (row)
    bv2_ref: (1, 1)      f32   V[2] bias
    out_ref: (TB, 1)     f32
    """
    A, E = n_agents, embed_dim
    AE = A * E

    # In-kernel f32 -> bf16 cast of the state tile (wrapper no longer makes a
    # casted/padded HBM copy), then a single fused MXU pass for all four
    # state-conditioned projections with f32 accumulation; f32 bias post-matmul.
    s = s_ref[...].astype(jnp.bfloat16)
    fused = jnp.dot(s, fw_ref[...],
                    preferred_element_type=jnp.float32) + fb_ref[...]

    w1 = jnp.abs(fused[:, :AE])                              # (TB, A*E)
    b1 = fused[:, AE:AE + E]                                 # (TB, E)
    wf = jnp.abs(fused[:, AE + E:AE + 2 * E])                # (TB, E)
    hv = jnp.maximum(fused[:, AE + 2 * E:AE + 3 * E], 0.0)   # (TB, E) ReLU

    # Exact f32 agent mixing on the VPU: sum_a q[:, a] * |w1|[:, a*E:(a+1)*E].
    # (A is tiny; avoids any MXU precision ambiguity on q.)
    q = q_ref[...]
    mixed = q[:, 0:1] * w1[:, :E]
    for a in range(1, A):
        mixed = mixed + q[:, a:a + 1] * w1[:, a * E:(a + 1) * E]

    hidden = mixed + b1
    hidden = jnp.where(hidden > 0, hidden, jnp.expm1(hidden))   # ELU, alpha=1

    v = jnp.sum(hv * wv2_ref[...], axis=-1, keepdims=True) + bv2_ref[...]
    out_ref[...] = jnp.sum(hidden * wf, axis=-1, keepdims=True) + v


# ------------------------------ JAX wrappers --------------------------------

def vdn_mix(q2d, *, block_b=32768):
    B, A = q2d.shape
    q2d = q2d.astype(jnp.float32)

    if B >= 128:
        # Lane-dense path: fold 128 batch rows into the lane dim.
        Bp = _round_up(B, 128)
        qp = q2d if Bp == B else jnp.pad(q2d, ((0, Bp - B), (0, 0)))
        G = Bp // 128
        # (G, 128, A) -> (G, A, 128): lane j of row (g, a) is q[g*128 + j, a].
        qf = qp.reshape(G, 128, A).transpose(0, 2, 1)
        if G <= 16:
            tg = G                                  # single / full blocks
        else:
            tg = min(max(8, block_b // 128),
                     _round_up(pl.cdiv(G, 2), 8))   # >=2 steps, mult-of-8 tile
        out = pl.pallas_call(
            functools.partial(_vdn_folded_kernel, n_agents=A),
            out_shape=jax.ShapeDtypeStruct((G, 128), jnp.float32),
            grid=(pl.cdiv(G, tg),),
            in_specs=[pl.BlockSpec((tg, A, 128), lambda i: (i, 0, 0))],
            out_specs=pl.BlockSpec((tg, 128), lambda i: (i, 0)),
            compiler_params=pltpu.CompilerParams(
                dimension_semantics=("parallel",)),
        )(qf)
        return out.reshape(Bp, 1)[:B]

    # Tiny-batch fallback: one small row-sum block.
    Bp = _round_up(B, 8)
    qp = q2d if Bp == B else jnp.pad(q2d, ((0, Bp - B), (0, 0)))
    out = pl.pallas_call(
        _vdn_rowsum_kernel,
        out_shape=jax.ShapeDtypeStruct((Bp, 1), jnp.float32),
        grid=(1,),
        in_specs=[pl.BlockSpec((Bp, A), lambda i: (i, 0))],
        out_specs=pl.BlockSpec((Bp, 1), lambda i: (i, 0)),
        compiler_params=pltpu.CompilerParams(
            dimension_semantics=("parallel",)),
    )(qp)
    return out[:B]


def qmix_mix(q2d, s2d, params, *, block_b=2048):
    B, A = q2d.shape
    S = s2d.shape[-1]
    E = params["bb1"].shape[-1]
    AE = A * E
    C = AE + 3 * E
    Cpad = _round_up(C, 128)

    # Fuse the four hypernet projections into one (S, Cpad) matmul.
    fw = jnp.concatenate(
        [params["w1"], params["wb1"], params["wf"], params["wv1"]], axis=1)
    fb = jnp.concatenate(
        [params["b1"], params["bb1"], params["bf"], params["bv1"]], axis=1)
    if Cpad != C:
        fw = jnp.pad(fw, ((0, 0), (0, Cpad - C)))
        fb = jnp.pad(fb, ((0, 0), (0, Cpad - C)))
    fw = fw.astype(jnp.bfloat16)              # MXU operands in bf16 (resident)
    fb = fb.astype(jnp.float32)               # bias added in f32 post-matmul
    wv2 = params["wv2"].reshape(1, E).astype(jnp.float32)
    bv2 = params["bv2"].reshape(1, 1).astype(jnp.float32)

    q2d = q2d.astype(jnp.float32)
    s2d = s2d.astype(jnp.float32)             # no-op / no copy if already f32

    # Row tile: cap at block_b rows (f32 state tile dominates the VMEM budget:
    # 2 buffers * tb * S * 4B) and at ceil(B/2) so the grid keeps >=2 steps
    # whenever possible (v7x has 2 TensorCores sharding the "parallel" axis).
    tb = max(8, min(block_b, _round_up(pl.cdiv(B, 2), 8)))
    grid = (pl.cdiv(B, tb),)

    kernel = functools.partial(_qmix_kernel, n_agents=A, embed_dim=E)
    cost = pl.CostEstimate(
        flops=int(2 * B * S * Cpad + 4 * B * AE + 8 * B * E),
        transcendentals=int(B * E),
        bytes_accessed=int(B * S * 4 + B * A * 4 + B * 4
                           + S * Cpad * 2 + Cpad * 4 + E * 4 + 4),
    )
    # VMEM budget at tb=2048, S=768: state ~12 MiB (x2 buf), q (lane-padded to
    # 128) ~2 MiB, out ~2 MiB, weights ~0.9 MiB, f32 intermediates ~4 MiB.
    out = pl.pallas_call(
        kernel,
        out_shape=jax.ShapeDtypeStruct((B, 1), jnp.float32),
        grid=grid,
        in_specs=[
            pl.BlockSpec((tb, A), lambda i: (i, 0)),     # q tile
            pl.BlockSpec((tb, S), lambda i: (i, 0)),     # f32 state tile
            pl.BlockSpec((S, Cpad), lambda i: (0, 0)),   # fused weight (resident)
            pl.BlockSpec((1, Cpad), lambda i: (0, 0)),   # fused bias (resident)
            pl.BlockSpec((1, E), lambda i: (0, 0)),      # V[2] weight row
            pl.BlockSpec((1, 1), lambda i: (0, 0)),      # V[2] bias
        ],
        out_specs=pl.BlockSpec((tb, 1), lambda i: (i, 0)),
        compiler_params=pltpu.CompilerParams(
            dimension_semantics=("parallel",),
            vmem_limit_bytes=48 * 1024 * 1024),
        cost_estimate=cost,
    )(q2d, s2d, fw, fb, wv2, bv2)
    return out


def mixer_forward(chosen_action_value, state=None, *, n_agents, needs_state,
                  state_shape=None, params=None, block_b=None):
    """Replicates Mixer.forward: shape validation + mix + output-shape check."""
    if chosen_action_value.shape[-2:] != (n_agents, 1):
        raise ValueError(
            f"Mixer network expected chosen_action_value with last 2 dimensions "
            f"{(n_agents, 1)}, but got {chosen_action_value.shape}")
    batch_dims = chosen_action_value.shape[:-2]
    q2d = chosen_action_value.reshape(-1, n_agents).astype(jnp.float32)

    if not needs_state:
        if state is not None:
            raise ValueError("Mixer that doesn't need state was passed more than 1 input")
        out = vdn_mix(q2d) if block_b is None else vdn_mix(q2d, block_b=block_b)
    else:
        if state is None:
            raise ValueError("Mixer that needs state was passed fewer than 2 inputs")
        if state.shape[-len(state_shape):] != tuple(state_shape):
            raise ValueError(
                f"Mixer network expected state with ending shape {state_shape}, "
                f"but got state shape {state.shape}")
        s2d = state.reshape(-1, int(np.prod(state_shape)))
        out = (qmix_mix(q2d, s2d, params) if block_b is None
               else qmix_mix(q2d, s2d, params, block_b=block_b))

    out = out.reshape(*batch_dims, 1)
    if out.shape != (*batch_dims, 1):
        raise ValueError(
            f"Mixer network expected output with same shape as input minus the "
            f"multi-agent dimension, but got {out.shape}")
    return out


# ------------------------- deterministic parameters -------------------------

def init_qmix_params(key, state_dim, n_agents, embed_dim):
    ks = jax.random.split(key, 10)
    scale = 0.02

    def lin(kw, kb, fan_in, fan_out):
        w = scale * jax.random.normal(kw, (fan_in, fan_out), jnp.float32)
        b = scale * jax.random.normal(kb, (1, fan_out), jnp.float32)
        return w, b

    w1, b1 = lin(ks[0], ks[1], state_dim, n_agents * embed_dim)   # hyper_w_1
    wb1, bb1 = lin(ks[2], ks[3], state_dim, embed_dim)            # hyper_b_1
    wf, bf = lin(ks[4], ks[5], state_dim, embed_dim)              # hyper_w_final
    wv1, bv1 = lin(ks[6], ks[7], state_dim, embed_dim)            # V[0]
    wv2, bv2 = lin(ks[8], ks[9], embed_dim, 1)                    # V[2]
    return dict(w1=w1, b1=b1, wb1=wb1, bb1=bb1, wf=wf, bf=bf,
                wv1=wv1, bv1=bv1, wv2=wv2, bv2=bv2)


def qmix_reference(q2d, s2d, p, *, matmul_dtype=jnp.float32):
    """Pure-JAX reference; matmul_dtype=bf16 mirrors the kernel's MXU precision."""
    def mm(a, w):
        return jnp.dot(a.astype(matmul_dtype).astype(jnp.float32),
                       w.astype(matmul_dtype).astype(jnp.float32),
                       preferred_element_type=jnp.float32)
    w1 = jnp.abs(mm(s2d, p["w1"]) + p["b1"])
    b1 = mm(s2d, p["wb1"]) + p["bb1"]
    B, A = q2d.shape
    E = b1.shape[-1]
    hidden = jnp.einsum("ba,bae->be", q2d, w1.reshape(B, A, E)) + b1
    hidden = jax.nn.elu(hidden)
    wf = jnp.abs(mm(s2d, p["wf"]) + p["bf"])
    v = jax.nn.relu(mm(s2d, p["wv1"]) + p["bv1"]) @ p["wv2"] + p["bv2"]
    return jnp.sum(hidden * wf, axis=-1, keepdims=True) + v


# ----------------------------------- main -----------------------------------

if __name__ == "__main__":
    key = jax.random.PRNGKey(0)
    k_q, k_s, k_p, k_q2, k_s2, k_q3 = jax.random.split(key, 6)

    n_agents = 4
    embed_dim = 32
    state_shape = (16, 16, 3)
    state_dim = int(np.prod(state_shape))
    params = init_qmix_params(k_p, state_dim, n_agents, embed_dim)

    # --- VDN (needs_state=False), tiny batch -> row-sum fallback kernel ---
    batch_dims = (2, 4)
    cav = jax.random.normal(k_q, (*batch_dims, n_agents, 1), jnp.float32)
    out_vdn = mixer_forward(cav, None, n_agents=n_agents, needs_state=False)
    out_vdn = jax.block_until_ready(out_vdn)
    assert out_vdn.shape == (*batch_dims, 1)
    np.testing.assert_allclose(np.asarray(out_vdn),
                               np.asarray(jnp.sum(cav, axis=-2)),
                               rtol=1e-5, atol=1e-5)

    # --- VDN, larger batch -> lane-dense folded kernel ---
    cav_big = jax.random.normal(k_q3, (384, n_agents, 1), jnp.float32)
    out_vdn_big = mixer_forward(cav_big, None, n_agents=n_agents,
                                needs_state=False)
    out_vdn_big = jax.block_until_ready(out_vdn_big)
    assert out_vdn_big.shape == (384, 1)
    np.testing.assert_allclose(np.asarray(out_vdn_big),
                               np.asarray(jnp.sum(cav_big, axis=-2)),
                               rtol=1e-5, atol=1e-5)

    # --- QMix (needs_state=True), small batch, single grid step ---
    state = jax.random.normal(k_s, (*batch_dims, *state_shape), jnp.float32)
    out_qmix = mixer_forward(cav, state, n_agents=n_agents, needs_state=True,
                             state_shape=state_shape, params=params)
    out_qmix = jax.block_until_ready(out_qmix)
    assert out_qmix.shape == (*batch_dims, 1)
    q_flat = cav.reshape(-1, n_agents)
    s_flat = state.reshape(-1, state_dim)
    ref_bf16 = qmix_reference(q_flat, s_flat, params,
                              matmul_dtype=jnp.bfloat16).reshape(*batch_dims, 1)
    ref_f32 = qmix_reference(q_flat, s_flat, params,
                             matmul_dtype=jnp.float32).reshape(*batch_dims, 1)
    np.testing.assert_allclose(np.asarray(out_qmix), np.asarray(ref_bf16),
                               rtol=2e-3, atol=2e-3)
    np.testing.assert_allclose(np.asarray(out_qmix), np.asarray(ref_f32),
                               rtol=1e-1, atol=1e-1)

    # --- QMix, larger batch -> 2 grid steps, resident hypernet weights ---
    batch_dims2 = (4, 16)      # B = 64 -> tb = 32, grid = (2,)
    cav2 = jax.random.normal(k_q2, (*batch_dims2, n_agents, 1), jnp.float32)
    state2 = jax.random.normal(k_s2, (*batch_dims2, *state_shape), jnp.float32)
    out_qmix2 = mixer_forward(cav2, state2, n_agents=n_agents, needs_state=True,
                              state_shape=state_shape, params=params)
    out_qmix2 = jax.block_until_ready(out_qmix2)
    assert out_qmix2.shape == (*batch_dims2, 1)
    ref2 = qmix_reference(cav2.reshape(-1, n_agents),
                          state2.reshape(-1, state_dim), params,
                          matmul_dtype=jnp.bfloat16).reshape(*batch_dims2, 1)
    np.testing.assert_allclose(np.asarray(out_qmix2), np.asarray(ref2),
                               rtol=2e-3, atol=2e-3)

    print("KERNEL_OK")
</pallas_src>

<mosaic_0001>
module attributes {stable_mosaic.version = 11 : i64} {
  func.func @_vdn_rowsum_kernel(%arg0: i32, %arg1: memref<8x4xf32, #tpu.memory_space<vmem>>, %arg2: memref<8x1xf32, #tpu.memory_space<vmem>>) attributes {dimension_semantics = [#tpu.dimension_semantics<parallel>], iteration_bounds = array<i64: 1>, scalar_prefetch = 0 : i64, scratch_operands = 0 : i64, tpu.core_type = #tpu.core_type<tc>, window_params = [{transform_indices = @transform_0, window_bounds = array<i64: 8, 4>}, {transform_indices = @transform_1, window_bounds = array<i64: 8, 1>}]} {
    %c0 = arith.constant 0 : index
    %c0_0 = arith.constant 0 : index
    %0 = vector.load %arg1[%c0, %c0_0] : memref<8x4xf32, #tpu.memory_space<vmem>>, vector<8x4xf32>
    %cst = arith.constant dense<0.000000e+00> : vector<8xf32>
    %1 = vector.multi_reduction <add>, %0, %cst [1] : vector<8x4xf32> to vector<8xf32>
    %2 = vector.shape_cast %1 : vector<8xf32> to vector<8x1xf32>
    %c0_1 = arith.constant 0 : index
    %c0_2 = arith.constant 0 : index
    %3 = vector.load %arg2[%c0_1, %c0_2] : memref<8x1xf32, #tpu.memory_space<vmem>>, vector<8x1xf32>
    tpu.vector_store %arg2[%c0_1, %c0_2], %2 {strides = array<i32>} : memref<8x1xf32, #tpu.memory_space<vmem>>, vector<8x1xf32>,
    return
  }
  func.func @transform_0(%arg0: i32) -> (i32, i32) {
    %c0_i32 = arith.constant 0 : i32
    %c0_i32_0 = arith.constant 0 : i32
    return %arg0, %c0_i32 : i32, i32
  }
  func.func @transform_1(%arg0: i32) -> (i32, i32) {
    %c0_i32 = arith.constant 0 : i32
    %c0_i32_0 = arith.constant 0 : i32
    return %arg0, %c0_i32 : i32, i32
  }
}

</mosaic_0001>

<bundles_post_ra>
// kernel: tpu_custom_call.1
= control target key start
LH: loop header
LB: loop body
LE: loop exit
PB: predicated region body
PF: predicated region fallthrough
CT: control target
= control target key end

     0   :  { %vm9_vm0 = vcmask 31744   ;;  %vm13_vm1 = vcmask 7168   ;;  %s35_s0 = inlined_call_operand.vmem [shape: f32[8,4], index: 0, kind: input, shape index: {}]   ;;  %s36_s1 = inlined_call_operand.vmem [shape: f32[8,1], index: 1, kind: output, shape index: {}]  }
   0x1   :  { %v8_v0 = vld [vmem:[%s35_s0] sm:$0xff] }
   0x2   :  { %v10_v1 = vsel %vm9_vm0, %v8_v0, 0.0 }
   0x3   :  { %11 = vadd.xlane.f32.xlu0 %v10_v1 }
  0x76   :  { %v12_v2 = vpop.xlane.xlu0 %11 }
  0x77   :  { %14 = vst.msk [vmem:[%s36_s1] sm:$0xff] %vm13_vm1, %v12_v2 }

</bundles_post_ra>
